<compile_context>
chip_gen: v6e
topology: v6e:2x2x1
jax: 0.10.0
libtpu: 0.0.40
codegen_flags: <defaults>
</compile_context>

<pallas_src>
import functools

import jax
import jax.numpy as jnp
from jax.experimental import pallas as pl
from jax.experimental.pallas import tpu as pltpu


def _round_up(v, m):
    return (v + m - 1) // m * m


def _stats_kernel(x_ref, w_ref, sum_ref, sumsq_ref):
    """Per M-tile: y = x @ W, accumulate per-channel sum and sum of squares."""
    @pl.when(pl.program_id(0) == 0)
    def _init():
        sum_ref[...] = jnp.zeros_like(sum_ref)
        sumsq_ref[...] = jnp.zeros_like(sumsq_ref)

    # No operand upcast: bf16/f32 inputs go straight to the MXU; f32 accumulate
    # via preferred_element_type.
    y = jnp.dot(x_ref[...], w_ref[...], preferred_element_type=jnp.float32)

    # Channel sums via a ones-row matmul: keeps the reduction on the (otherwise
    # underutilized) MXU instead of the XLU sublane-reduce path.
    ones = jnp.ones((1, y.shape[0]), jnp.float32)
    sum_ref[...] += jnp.dot(ones, y, preferred_element_type=jnp.float32)
    sumsq_ref[...] += jnp.dot(ones, y * y, preferred_element_type=jnp.float32)


def _norm_kernel(x_ref, w_ref, scale_ref, shift_ref, o_ref):
    """Per M-tile: y = x @ W, then folded BN affine y*scale + shift."""
    y = jnp.dot(x_ref[...], w_ref[...], preferred_element_type=jnp.float32)
    o_ref[...] = (y * scale_ref[...] + shift_ref[...]).astype(o_ref.dtype)


def shortcut_projection(x, conv_w, conv_b, bn_gamma, bn_beta, *,
                        stride, eps=1e-5, block_m=512):
    """x: (N, Cin, H, W) NCHW. conv_w: (Cout, Cin, 1, 1). Returns (N, Cout, Ho, Wo).

    conv_b is accepted for API parity with nn.Conv2d but unused: training-mode
    BatchNorm subtracts the batch mean, so a per-channel conv bias cancels
    exactly and has no effect on the forward output.
    """
    del conv_b
    N, Cin, H, W = x.shape
    Cout = conv_w.shape[0]

    # stride of a 1x1 conv == spatial subsampling; flatten NHWC -> (M, Cin).
    # TODO(synk): keep activations NHWC upstream / fuse the stride into the
    # kernel DMA (strided index_map) to remove this extra XLA copy over HBM.
    xs = x[:, :, ::stride, ::stride]
    Ho, Wo = xs.shape[2], xs.shape[3]
    M = N * Ho * Wo
    xm = jnp.transpose(xs, (0, 2, 3, 1)).reshape(M, Cin)

    # Lane-dense output channels (multiple of 128 -> unmasked vector stores).
    Cp = _round_up(Cout, 128)
    # ~512-row M tiles: double-buffered tiles fit VMEM on v5e/v6e/v7x while
    # amortizing per-grid-step overhead; shrink for tiny problems.
    tm = min(block_m, _round_up(M, 8))
    Mp = _round_up(M, tm)
    if Mp != M:
        xm = jnp.pad(xm, ((0, Mp - M), (0, 0)))  # zero rows: no effect on sums
    num_tiles = Mp // tm

    wm = jnp.pad(conv_w.reshape(Cout, Cin).T, ((0, 0), (0, Cp - Cout)))  # (Cin, Cp)
    gamma_p = jnp.pad(bn_gamma.astype(jnp.float32), (0, Cp - Cout),
                      constant_values=1.0)
    beta_p = jnp.pad(bn_beta.astype(jnp.float32), (0, Cp - Cout))

    cparams_seq = pltpu.CompilerParams(
        dimension_semantics=("arbitrary",), vmem_limit_bytes=32 * 1024 * 1024)
    cparams_par = pltpu.CompilerParams(
        dimension_semantics=("parallel",), vmem_limit_bytes=32 * 1024 * 1024)

    # ---- phase 1: batch statistics (resident accumulator outputs) ----------
    sums, sumsqs = pl.pallas_call(
        _stats_kernel,
        out_shape=(jax.ShapeDtypeStruct((1, Cp), jnp.float32),
                   jax.ShapeDtypeStruct((1, Cp), jnp.float32)),
        grid_spec=pltpu.PrefetchScalarGridSpec(
            num_scalar_prefetch=0,
            grid=(num_tiles,),
            in_specs=[pl.BlockSpec((tm, Cin), lambda i: (i, 0)),
                      pl.BlockSpec((Cin, Cp), lambda i: (0, 0))],
            out_specs=[pl.BlockSpec((1, Cp), lambda i: (0, 0)),
                       pl.BlockSpec((1, Cp), lambda i: (0, 0))],
        ),
        compiler_params=cparams_seq,
    )(xm, wm)

    # Fold mean/var/gamma/beta into per-channel scale & shift (tiny XLA work).
    count = jnp.float32(M)  # true row count: zero-padded rows contribute 0
    mean = sums / count
    var = jnp.maximum(sumsqs / count - mean * mean, 0.0)
    inv_std = jax.lax.rsqrt(var + eps)
    scale = gamma_p[None, :] * inv_std
    shift = beta_p[None, :] - mean * scale

    # ---- phase 2: normalize (M-parallel, lane-dense output) ----------------
    out = pl.pallas_call(
        _norm_kernel,
        out_shape=jax.ShapeDtypeStruct((Mp, Cp), x.dtype),
        grid_spec=pltpu.PrefetchScalarGridSpec(
            num_scalar_prefetch=0,
            grid=(num_tiles,),
            in_specs=[pl.BlockSpec((tm, Cin), lambda i: (i, 0)),
                      pl.BlockSpec((Cin, Cp), lambda i: (0, 0)),
                      pl.BlockSpec((1, Cp), lambda i: (0, 0)),
                      pl.BlockSpec((1, Cp), lambda i: (0, 0))],
            out_specs=pl.BlockSpec((tm, Cp), lambda i: (i, 0)),
        ),
        compiler_params=cparams_par,
    )(xm, wm, scale, shift)

    out = out[:M, :Cout]
    return jnp.transpose(out.reshape(N, Ho, Wo, Cout), (0, 3, 1, 2))


def _reference(x, conv_w, conv_b, bn_gamma, bn_beta, *, stride, eps=1e-5):
    """Pure-JAX reference of the PyTorch forward (training-mode BN)."""
    xs = x[:, :, ::stride, ::stride]
    y = jnp.einsum("nchw,oc->nohw", xs, conv_w.reshape(conv_w.shape[0], -1))
    y = y + conv_b[None, :, None, None]
    mean = jnp.mean(y, axis=(0, 2, 3), keepdims=True)
    var = jnp.mean((y - mean) ** 2, axis=(0, 2, 3), keepdims=True)
    return (y - mean) / jnp.sqrt(var + eps) * bn_gamma[None, :, None, None] \
        + bn_beta[None, :, None, None]


if __name__ == "__main__":
    # small shapes consistent with the module
    N, Cin, H, W = 2, 4, 16, 16
    Cout, stride = 8, 2

    key = jax.random.PRNGKey(0)
    kx, kw, kb = jax.random.split(key, 3)

    x = jax.random.normal(kx, (N, Cin, H, W), dtype=jnp.float32)

    # deterministic parameter init (same shapes as nn.Conv2d / nn.BatchNorm2d)
    fan_in = Cin * 1 * 1
    bound = 1.0 / (fan_in ** 0.5)
    conv_w = jax.random.uniform(kw, (Cout, Cin, 1, 1), jnp.float32, -bound, bound)
    conv_b = jax.random.uniform(kb, (Cout,), jnp.float32, -bound, bound)
    bn_gamma = jnp.ones((Cout,), jnp.float32)   # PyTorch BN default init
    bn_beta = jnp.zeros((Cout,), jnp.float32)

    run = jax.jit(functools.partial(shortcut_projection, stride=stride))
    out = run(x, conv_w, conv_b, bn_gamma, bn_beta)
    out = jax.block_until_ready(out)

    ref = _reference(x, conv_w, conv_b, bn_gamma, bn_beta, stride=stride)
    assert out.shape == (N, Cout, H // stride, W // stride)
    assert jnp.allclose(out, ref, atol=1e-4, rtol=1e-4)

    print("KERNEL_OK")
</pallas_src>

<mosaic_0001>
module attributes {stable_mosaic.version = 11 : i64} {
  func.func @_stats_kernel(%arg0: i32, %arg1: memref<128x4xf32, #tpu.memory_space<vmem>>, %arg2: memref<4x128xf32, #tpu.memory_space<vmem>>, %arg3: memref<1x128xf32, #tpu.memory_space<vmem>>, %arg4: memref<1x128xf32, #tpu.memory_space<vmem>>) attributes {dimension_semantics = [#tpu.dimension_semantics<arbitrary>], iteration_bounds = array<i64: 1>, scalar_prefetch = 0 : i64, scratch_operands = 0 : i64, tpu.core_type = #tpu.core_type<tc>, window_params = [{transform_indices = @transform_0, window_bounds = array<i64: 128, 4>}, {pipeline_mode = #tpu.pipeline_mode<synchronous>, transform_indices = @transform_1, window_bounds = array<i64: 4, 128>}, {pipeline_mode = #tpu.pipeline_mode<synchronous>, transform_indices = @transform_2, window_bounds = array<i64: 1, 128>}, {pipeline_mode = #tpu.pipeline_mode<synchronous>, transform_indices = @transform_3, window_bounds = array<i64: 1, 128>}]} {
    %c0_i32 = arith.constant 0 : i32
    %0 = arith.cmpi eq, %arg0, %c0_i32 : i32
    %1 = arith.extui %0 : i1 to i32
    %c0_i32_0 = arith.constant 0 : i32
    %2 = arith.cmpi ne, %1, %c0_i32_0 : i32
    scf.if %2 {
      %cst_15 = arith.constant 0.000000e+00 : f32
      %16 = vector.broadcast %cst_15 : f32 to vector<1x128xf32>
      %c0_16 = arith.constant 0 : index
      %c0_17 = arith.constant 0 : index
      %17 = vector.load %arg3[%c0_16, %c0_17] : memref<1x128xf32, #tpu.memory_space<vmem>>, vector<1x128xf32>
      tpu.vector_store %arg3[%c0_16, %c0_17], %16 {strides = array<i32>} : memref<1x128xf32, #tpu.memory_space<vmem>>, vector<1x128xf32>,
      %cst_18 = arith.constant 0.000000e+00 : f32
      %18 = vector.broadcast %cst_18 : f32 to vector<1x128xf32>
      %c0_19 = arith.constant 0 : index
      %c0_20 = arith.constant 0 : index
      %19 = vector.load %arg4[%c0_19, %c0_20] : memref<1x128xf32, #tpu.memory_space<vmem>>, vector<1x128xf32>
      tpu.vector_store %arg4[%c0_19, %c0_20], %18 {strides = array<i32>} : memref<1x128xf32, #tpu.memory_space<vmem>>, vector<1x128xf32>,
    } else {
    }
    %c0 = arith.constant 0 : index
    %c0_1 = arith.constant 0 : index
    %3 = vector.load %arg1[%c0, %c0_1] : memref<128x4xf32, #tpu.memory_space<vmem>>, vector<128x4xf32>
    %c0_2 = arith.constant 0 : index
    %c0_3 = arith.constant 0 : index
    %4 = vector.load %arg2[%c0_2, %c0_3] : memref<4x128xf32, #tpu.memory_space<vmem>>, vector<4x128xf32>
    %cst = arith.constant dense<0.000000e+00> : vector<128x128xf32>
    %5 = tpu.matmul %3, %4, %cst {dimension_numbers = #tpu.dot_dimension_numbers<[1], [0], [0], [1], [0, 0, 1, 1], [], []>} : vector<128x4xf32>, vector<4x128xf32>, vector<128x128xf32> -> vector<128x128xf32>
    %cst_4 = arith.constant 1.000000e+00 : f32
    %6 = vector.broadcast %cst_4 : f32 to vector<1x128xf32>
    %c0_5 = arith.constant 0 : index
    %c0_6 = arith.constant 0 : index
    %7 = vector.load %arg3[%c0_5, %c0_6] : memref<1x128xf32, #tpu.memory_space<vmem>>, vector<1x128xf32>
    %cst_7 = arith.constant dense<0.000000e+00> : vector<1x128xf32>
    %8 = tpu.matmul %6, %5, %cst_7 {dimension_numbers = #tpu.dot_dimension_numbers<[1], [0], [0], [1], [0, 0, 1, 1], [], []>} : vector<1x128xf32>, vector<128x128xf32>, vector<1x128xf32> -> vector<1x128xf32>
    %9 = arith.addf %7, %8 : vector<1x128xf32>
    %c0_8 = arith.constant 0 : index
    %c0_9 = arith.constant 0 : index
    %10 = vector.load %arg3[%c0_8, %c0_9] : memref<1x128xf32, #tpu.memory_space<vmem>>, vector<1x128xf32>
    tpu.vector_store %arg3[%c0_8, %c0_9], %9 {strides = array<i32>} : memref<1x128xf32, #tpu.memory_space<vmem>>, vector<1x128xf32>,
    %c0_10 = arith.constant 0 : index
    %c0_11 = arith.constant 0 : index
    %11 = vector.load %arg4[%c0_10, %c0_11] : memref<1x128xf32, #tpu.memory_space<vmem>>, vector<1x128xf32>
    %12 = arith.mulf %5, %5 : vector<128x128xf32>
    %cst_12 = arith.constant dense<0.000000e+00> : vector<1x128xf32>
    %13 = tpu.matmul %6, %12, %cst_12 {dimension_numbers = #tpu.dot_dimension_numbers<[1], [0], [0], [1], [0, 0, 1, 1], [], []>} : vector<1x128xf32>, vector<128x128xf32>, vector<1x128xf32> -> vector<1x128xf32>
    %14 = arith.addf %11, %13 : vector<1x128xf32>
    %c0_13 = arith.constant 0 : index
    %c0_14 = arith.constant 0 : index
    %15 = vector.load %arg4[%c0_13, %c0_14] : memref<1x128xf32, #tpu.memory_space<vmem>>, vector<1x128xf32>
    tpu.vector_store %arg4[%c0_13, %c0_14], %14 {strides = array<i32>} : memref<1x128xf32, #tpu.memory_space<vmem>>, vector<1x128xf32>,
    return
  }
  func.func @transform_0(%arg0: i32) -> (i32, i32) {
    %c0_i32 = arith.constant 0 : i32
    %c0_i32_0 = arith.constant 0 : i32
    return %arg0, %c0_i32 : i32, i32
  }
  func.func @transform_1(%arg0: i32) -> (i32, i32) {
    %c0_i32 = arith.constant 0 : i32
    %c0_i32_0 = arith.constant 0 : i32
    %c0_i32_1 = arith.constant 0 : i32
    return %c0_i32, %c0_i32_0 : i32, i32
  }
  func.func @transform_2(%arg0: i32) -> (i32, i32) {
    %c0_i32 = arith.constant 0 : i32
    %c0_i32_0 = arith.constant 0 : i32
    %c0_i32_1 = arith.constant 0 : i32
    return %c0_i32, %c0_i32_0 : i32, i32
  }
  func.func @transform_3(%arg0: i32) -> (i32, i32) {
    %c0_i32 = arith.constant 0 : i32
    %c0_i32_0 = arith.constant 0 : i32
    %c0_i32_1 = arith.constant 0 : i32
    return %c0_i32, %c0_i32_0 : i32, i32
  }
}

module attributes {stable_mosaic.version = 11 : i64} {
  func.func @_norm_kernel(%arg0: i32, %arg1: memref<128x4xf32, #tpu.memory_space<vmem>>, %arg2: memref<4x128xf32, #tpu.memory_space<vmem>>, %arg3: memref<1x128xf32, #tpu.memory_space<vmem>>, %arg4: memref<1x128xf32, #tpu.memory_space<vmem>>, %arg5: memref<128x128xf32, #tpu.memory_space<vmem>>) attributes {dimension_semantics = [#tpu.dimension_semantics<parallel>], iteration_bounds = array<i64: 1>, scalar_prefetch = 0 : i64, scratch_operands = 0 : i64, tpu.core_type = #tpu.core_type<tc>, window_params = [{transform_indices = @transform_0, window_bounds = array<i64: 128, 4>}, {pipeline_mode = #tpu.pipeline_mode<synchronous>, transform_indices = @transform_1, window_bounds = array<i64: 4, 128>}, {pipeline_mode = #tpu.pipeline_mode<synchronous>, transform_indices = @transform_2, window_bounds = array<i64: 1, 128>}, {pipeline_mode = #tpu.pipeline_mode<synchronous>, transform_indices = @transform_3, window_bounds = array<i64: 1, 128>}, {transform_indices = @transform_4, window_bounds = array<i64: 128, 128>}]} {
    %c0 = arith.constant 0 : index
    %c0_0 = arith.constant 0 : index
    %0 = vector.load %arg1[%c0, %c0_0] : memref<128x4xf32, #tpu.memory_space<vmem>>, vector<128x4xf32>
    %c0_1 = arith.constant 0 : index
    %c0_2 = arith.constant 0 : index
    %1 = vector.load %arg2[%c0_1, %c0_2] : memref<4x128xf32, #tpu.memory_space<vmem>>, vector<4x128xf32>
    %cst = arith.constant dense<0.000000e+00> : vector<128x128xf32>
    %2 = tpu.matmul %0, %1, %cst {dimension_numbers = #tpu.dot_dimension_numbers<[1], [0], [0], [1], [0, 0, 1, 1], [], []>} : vector<128x4xf32>, vector<4x128xf32>, vector<128x128xf32> -> vector<128x128xf32>
    %c0_3 = arith.constant 0 : index
    %c0_4 = arith.constant 0 : index
    %3 = vector.load %arg3[%c0_3, %c0_4] : memref<1x128xf32, #tpu.memory_space<vmem>>, vector<1x128xf32>
    %4 = vector.broadcast %3 : vector<1x128xf32> to vector<128x128xf32>
    %5 = arith.mulf %2, %4 : vector<128x128xf32>
    %c0_5 = arith.constant 0 : index
    %c0_6 = arith.constant 0 : index
    %6 = vector.load %arg4[%c0_5, %c0_6] : memref<1x128xf32, #tpu.memory_space<vmem>>, vector<1x128xf32>
    %7 = vector.broadcast %6 : vector<1x128xf32> to vector<128x128xf32>
    %8 = arith.addf %5, %7 : vector<128x128xf32>
    %c0_7 = arith.constant 0 : index
    %c0_8 = arith.constant 0 : index
    %9 = vector.load %arg5[%c0_7, %c0_8] : memref<128x128xf32, #tpu.memory_space<vmem>>, vector<128x128xf32>
    tpu.vector_store %arg5[%c0_7, %c0_8], %8 {strides = array<i32>} : memref<128x128xf32, #tpu.memory_space<vmem>>, vector<128x128xf32>,
    return
  }
  func.func @transform_0(%arg0: i32) -> (i32, i32) {
    %c0_i32 = arith.constant 0 : i32
    %c0_i32_0 = arith.constant 0 : i32
    return %arg0, %c0_i32 : i32, i32
  }
  func.func @transform_1(%arg0: i32) -> (i32, i32) {
    %c0_i32 = arith.constant 0 : i32
    %c0_i32_0 = arith.constant 0 : i32
    %c0_i32_1 = arith.constant 0 : i32
    return %c0_i32, %c0_i32_0 : i32, i32
  }
  func.func @transform_2(%arg0: i32) -> (i32, i32) {
    %c0_i32 = arith.constant 0 : i32
    %c0_i32_0 = arith.constant 0 : i32
    %c0_i32_1 = arith.constant 0 : i32
    return %c0_i32, %c0_i32_0 : i32, i32
  }
  func.func @transform_3(%arg0: i32) -> (i32, i32) {
    %c0_i32 = arith.constant 0 : i32
    %c0_i32_0 = arith.constant 0 : i32
    %c0_i32_1 = arith.constant 0 : i32
    return %c0_i32, %c0_i32_0 : i32, i32
  }
  func.func @transform_4(%arg0: i32) -> (i32, i32) {
    %c0_i32 = arith.constant 0 : i32
    %c0_i32_0 = arith.constant 0 : i32
    return %arg0, %c0_i32 : i32, i32
  }
}

</mosaic_0001>

<bundles_post_ra>
// kernel: shortcut_projection.2
= control target key start
LH: loop header
LB: loop body
LE: loop exit
PB: predicated region body
PF: predicated region fallthrough
CT: control target
= control target key end

     0   :  { %vm85_vm0 = vcmask 1043456   ;;  %vm36_vm1 = vcmask 31744   ;;  %v571_v17 = vmov 0.0   ;;  %vm572_vm2 = vmmov 0   ;;  %s740_s1 = inlined_call_operand.vmem [shape: f32[4,128], index: 1, kind: input, shape index: {}]   ;;  %s741_s0 = inlined_call_operand.vmem [shape: f32[128,4], index: 0, kind: input, shape index: {}]   ;;  %s742_s2 = inlined_call_operand.vmem [shape: f32[1,128], index: 2, kind: output, shape index: {0}]   ;;  %s743_s3 = inlined_call_operand.vmem [shape: f32[1,128], index: 3, kind: output, shape index: {1}]  }
   0x1   :  { %v35_v0 = vld [vmem:[%s740_s1] sm:$0xf]  ;;  %v20_v2 = vld [vmem:[%s741_s0 + $0x8] sm:$0xff]  ;;  %v21_v3 = vld [vmem:[%s741_s0 + $0x10] sm:$0xff]  ;;  %498 = vmatprep.subr.mxu1 %v571_v17  ;;  %530 = vmatprep.mubr.msk.f32.mxu1 %vm572_vm2, %v571_v17  ;;  %17 = vst [vmem:[%s742_s2] sm:$0x1] %v571_v17  ;;  %v573_v50 = vmov 1.0  }
   0x2   :  { %v19_v1 = vld [vmem:[%s741_s0] sm:$0xff]  ;;  %472 = vmatprep.subr.msk.mxu0 %vm85_vm0, %v35_v0  ;;  %v22_v4 = vld [vmem:[%s741_s0 + $0x18] sm:$0xff]  ;;  %v24_v6 = vld [vmem:[%s741_s0 + $0x28] sm:$0xff]  ;;  %18 = vst [vmem:[%s743_s3] sm:$0x1] %v571_v17 }
   0x3   :  { %474 = vmatprep.mubr.msk.f32.mxu0 %vm36_vm1, %v19_v1  ;;  %473 = vmatpush3.msk.msra.mxu0 %vm85_vm0, %v35_v0  ;;  %v23_v5 = vld [vmem:[%s741_s0 + $0x20] sm:$0xff]  ;;  %v25_v7 = vld [vmem:[%s741_s0 + $0x30] sm:$0xff]  ;;  %v26_v8 = vld [vmem:[%s741_s0 + $0x38] sm:$0xff] }
   0x4   :  { %475 = vmatmul.mubr.msk.f32.vlgmr.msra.gmra.mxu0 %vm36_vm1, %v20_v2  ;;  %v27_v9 = vld [vmem:[%s741_s0 + $0x40] sm:$0xff]  ;;  %v28_v10 = vld [vmem:[%s741_s0 + $0x48] sm:$0xff]  ;;  %v29_v11 = vld [vmem:[%s741_s0 + $0x50] sm:$0xff]  ;;  %533 = vmatprep.subr.mxu0 %v571_v17 }
   0x5   :  { %477 = vmatprep.mubr.msk.f32.mxu0 %vm36_vm1, %v21_v3  ;;  %v30_v12 = vld [vmem:[%s741_s0 + $0x58] sm:$0xff]  ;;  %v31_v13 = vld [vmem:[%s741_s0 + $0x60] sm:$0xff]  ;;  %v32_v14 = vld [vmem:[%s741_s0 + $0x68] sm:$0xff] }
   0x6   :  { %v33_v15 = vld [vmem:[%s741_s0 + $0x70] sm:$0xff]  ;;  %v34_v16 = vld [vmem:[%s741_s0 + $0x78] sm:$0xff] }
   0x8   :  { %478 = vmatmul.mubr.msk.f32.gmra.mxu0 %vm36_vm1, %v22_v4  ;;  %v234_v51 = vld [vmem:[%s742_s2] sm:$0x1] }
   0x9   :  { %480 = vmatprep.mubr.msk.f32.mxu0 %vm36_vm1, %v23_v5  ;;  %v307_v53 = vld [vmem:[%s743_s3] sm:$0x1] }
   0xc   :  { %481 = vmatmul.mubr.msk.f32.gmra.mxu0 %vm36_vm1, %v24_v6 }
   0xd   :  { %483 = vmatprep.mubr.msk.f32.mxu0 %vm36_vm1, %v25_v7 }
  0x10   :  { %484 = vmatmul.mubr.msk.f32.gmra.mxu0 %vm36_vm1, %v26_v8 }
  0x11   :  { %486 = vmatprep.mubr.msk.f32.mxu0 %vm36_vm1, %v27_v9 }
  0x14   :  { %487 = vmatmul.mubr.msk.f32.gmra.mxu0 %vm36_vm1, %v28_v10 }
  0x15   :  { %489 = vmatprep.mubr.msk.f32.mxu0 %vm36_vm1, %v29_v11 }
  0x18   :  { %490 = vmatmul.mubr.msk.f32.gmra.mxu0 %vm36_vm1, %v30_v12 }
  0x19   :  { %492 = vmatprep.mubr.msk.f32.mxu0 %vm36_vm1, %v31_v13 }
  0x1c   :  { %493 = vmatmul.mubr.msk.f32.gmra.mxu0 %vm36_vm1, %v32_v14 }
  0x1d   :  { %495 = vmatprep.mubr.msk.f32.mxu0 %vm36_vm1, %v33_v15 }
  0x20   :  { %496 = vmatmul.mubr.msk.f32.gmra.mxu0 %vm36_vm1, %v34_v16 }
  0x21   :  { %565 = vmatprep.mubr.msk.f32.mxu0 %vm572_vm2, %v571_v17 }
  0xc4   :  { %v669_v18 = vpop.f32.mrf.mxu0 }
  0xc5   :  { %v309_v48 = vmul.f32 %v669_v18, %v669_v18 }
  0xc6   :  { %v671_v19 = vpop.f32.mrf.mxu0 }
  0xc7   :  { %v308_v49 = vmul.f32 %v671_v19, %v671_v19 }
  0xc8   :  { %v673_v20 = vpop.f32.mrf.mxu0 }
  0xc9   :  { %v311_v46 = vmul.f32 %v673_v20, %v673_v20 }
  0xca   :  { %v675_v21 = vpop.f32.mrf.mxu0 }
  0xcb   :  { %v310_v47 = vmul.f32 %v675_v21, %v675_v21 }
  0xcc   :  { %v482_v22 = vpop.f32.mrf.mxu0 }
  0xcd   :  { %v313_v44 = vmul.f32 %v482_v22, %v482_v22 }
  0xce   :  { %v677_v23 = vpop.f32.mrf.mxu0 }
  0xcf   :  { %v312_v45 = vmul.f32 %v677_v23, %v677_v23 }
  0xd0   :  { %v485_v24 = vpop.f32.mrf.mxu0 }
  0xd1   :  { %v315_v42 = vmul.f32 %v485_v24, %v485_v24 }
  0xd2   :  { %v185_v25 = vpop.f32.mrf.mxu0 }
  0xd3   :  { %v314_v43 = vmul.f32 %v185_v25, %v185_v25 }
  0xd4   :  { %v488_v26 = vpop.f32.mrf.mxu0 }
  0xd5   :  { %v317_v40 = vmul.f32 %v488_v26, %v488_v26 }
  0xd6   :  { %v195_v27 = vpop.f32.mrf.mxu0 }
  0xd7   :  { %v316_v41 = vmul.f32 %v195_v27, %v195_v27 }
  0xd8   :  { %v491_v28 = vpop.f32.mrf.mxu0 }
  0xd9   :  { %v319_v38 = vmul.f32 %v491_v28, %v491_v28 }
  0xda   :  { %v205_v29 = vpop.f32.mrf.mxu0 }
  0xdb   :  { %v318_v39 = vmul.f32 %v205_v29, %v205_v29 }
  0xdc   :  { %v494_v30 = vpop.f32.mrf.mxu0 }
  0xdd   :  { %v321_v36 = vmul.f32 %v494_v30, %v494_v30 }
  0xde   :  { %v215_v31 = vpop.f32.mrf.mxu0 }
  0xdf   :  { %v320_v37 = vmul.f32 %v215_v31, %v215_v31 }
  0xe0   :  { %v497_v32 = vpop.f32.mrf.mxu0 }
  0xe1   :  { %v323_v33 = vmul.f32 %v497_v32, %v497_v32  ;;  %499 = vmatpush3.msra.mxu1 %v497_v32 }
  0xe2   :  { %v225_v34 = vpop.f32.mrf.mxu0  ;;  %500 = vmatprep.subr.mxu1 %v571_v17 }
  0xe3   :  { %v322_v35 = vmul.f32 %v225_v34, %v225_v34  ;;  %501 = vmatpush3.msra.mxu1 %v225_v34  ;;  %534 = vmatpush3.msra.mxu0 %v323_v33 }
  0xe4   :  { %502 = vmatprep.subr.mxu1 %v571_v17  ;;  %535 = vmatprep.subr.mxu0 %v571_v17 }
  0xe5   :  { %503 = vmatpush3.msra.mxu1 %v494_v30  ;;  %536 = vmatpush3.msra.mxu0 %v322_v35 }
  0xe6   :  { %504 = vmatprep.subr.mxu1 %v571_v17  ;;  %537 = vmatprep.subr.mxu0 %v571_v17 }
  0xe7   :  { %505 = vmatpush3.msra.mxu1 %v215_v31  ;;  %538 = vmatpush3.msra.mxu0 %v321_v36 }
  0xe8   :  { %506 = vmatprep.subr.mxu1 %v571_v17  ;;  %539 = vmatprep.subr.mxu0 %v571_v17 }
  0xe9   :  { %507 = vmatpush3.msra.mxu1 %v491_v28  ;;  %540 = vmatpush3.msra.mxu0 %v320_v37 }
  0xea   :  { %508 = vmatprep.subr.mxu1 %v571_v17  ;;  %541 = vmatprep.subr.mxu0 %v571_v17 }
  0xeb   :  { %509 = vmatpush3.msra.mxu1 %v205_v29  ;;  %542 = vmatpush3.msra.mxu0 %v319_v38 }
  0xec   :  { %510 = vmatprep.subr.mxu1 %v571_v17  ;;  %543 = vmatprep.subr.mxu0 %v571_v17 }
  0xed   :  { %511 = vmatpush3.msra.mxu1 %v488_v26  ;;  %544 = vmatpush3.msra.mxu0 %v318_v39 }
  0xee   :  { %512 = vmatprep.subr.mxu1 %v571_v17  ;;  %545 = vmatprep.subr.mxu0 %v571_v17 }
  0xef   :  { %513 = vmatpush3.msra.mxu1 %v195_v27  ;;  %546 = vmatpush3.msra.mxu0 %v317_v40 }
  0xf0   :  { %514 = vmatprep.subr.mxu1 %v571_v17  ;;  %547 = vmatprep.subr.mxu0 %v571_v17 }
  0xf1   :  { %515 = vmatpush3.msra.mxu1 %v485_v24  ;;  %548 = vmatpush3.msra.mxu0 %v316_v41 }
  0xf2   :  { %516 = vmatprep.subr.mxu1 %v571_v17  ;;  %549 = vmatprep.subr.mxu0 %v571_v17 }
  0xf3   :  { %517 = vmatpush3.msra.mxu1 %v185_v25  ;;  %550 = vmatpush3.msra.mxu0 %v315_v42 }
  0xf4   :  { %518 = vmatprep.subr.mxu1 %v571_v17  ;;  %551 = vmatprep.subr.mxu0 %v571_v17 }
  0xf5   :  { %519 = vmatpush3.msra.mxu1 %v482_v22  ;;  %552 = vmatpush3.msra.mxu0 %v314_v43 }
  0xf6   :  { %520 = vmatprep.subr.mxu1 %v571_v17  ;;  %553 = vmatprep.subr.mxu0 %v571_v17 }
  0xf7   :  { %521 = vmatpush3.msra.mxu1 %v677_v23  ;;  %554 = vmatpush3.msra.mxu0 %v313_v44 }
  0xf8   :  { %522 = vmatprep.subr.mxu1 %v571_v17  ;;  %555 = vmatprep.subr.mxu0 %v571_v17 }
  0xf9   :  { %523 = vmatpush3.msra.mxu1 %v673_v20  ;;  %556 = vmatpush3.msra.mxu0 %v312_v45 }
  0xfa   :  { %524 = vmatprep.subr.mxu1 %v571_v17  ;;  %557 = vmatprep.subr.mxu0 %v571_v17 }
  0xfb   :  { %525 = vmatpush3.msra.mxu1 %v675_v21  ;;  %558 = vmatpush3.msra.mxu0 %v311_v46 }
  0xfc   :  { %526 = vmatprep.subr.mxu1 %v571_v17  ;;  %559 = vmatprep.subr.mxu0 %v571_v17 }
  0xfd   :  { %527 = vmatpush3.msra.mxu1 %v669_v18  ;;  %560 = vmatpush3.msra.mxu0 %v310_v47 }
  0xfe   :  { %528 = vmatprep.subr.mxu1 %v571_v17  ;;  %561 = vmatprep.subr.mxu0 %v571_v17 }
  0xff   :  { %529 = vmatpush3.msra.mxu1 %v671_v19  ;;  %562 = vmatpush3.msra.mxu0 %v309_v48 }
 0x100   :  { %563 = vmatprep.subr.mxu0 %v571_v17  ;;  %531 = vmatmul.mubr.f32.vlgmr.msra.gmra.mxu1 %v573_v50 }
 0x101   :  { %564 = vmatpush3.msra.mxu0 %v308_v49 }
 0x102   :  { %566 = vmatmul.mubr.f32.vlgmr.msra.gmra.mxu0 %v573_v50 }
 0x1c0   :  { %v301_v52 = vpop.f32.mrf.mxu1 }
 0x1c1   :  { %v305_v54 = vadd.f32 %v301_v52, %v234_v51 }
 0x1c2   :  { %v390_v55 = vpop.f32.mrf.mxu0  ;;  %v532_v56 = vpop.f32.mrf.mxu1 }
 0x1c3   :  { %306 = vst [vmem:[%s742_s2] sm:$0x1] %v305_v54  ;;  %v394_v57 = vadd.f32 %v390_v55, %v307_v53 }
 0x1c4   :  { %v567_v58 = vpop.f32.mrf.mxu0 }
 0x1c5   :  { %395 = vst [vmem:[%s743_s3] sm:$0x1] %v394_v57 }

// kernel: shortcut_projection.3
= control target key start
LH: loop header
LB: loop body
LE: loop exit
PB: predicated region body
PF: predicated region fallthrough
CT: control target
= control target key end

     0   :  { %vm83_vm0 = vcmask 1043456   ;;  %vm34_vm1 = vcmask 31744   ;;  %s508_s1 = inlined_call_operand.vmem [shape: f32[4,128], index: 1, kind: input, shape index: {}]   ;;  %s509_s0 = inlined_call_operand.vmem [shape: f32[128,4], index: 0, kind: input, shape index: {}]   ;;  %s510_s2 = inlined_call_operand.vmem [shape: f32[1,128], index: 2, kind: input, shape index: {}]   ;;  %s511_s3 = inlined_call_operand.vmem [shape: f32[1,128], index: 3, kind: input, shape index: {}]   ;;  %s512_s4 = inlined_call_operand.vmem [shape: f32[128,128], index: 4, kind: output, shape index: {}]  }
   0x1   :  { %v33_v0 = vld [vmem:[%s508_s1] sm:$0xf]  ;;  %v18_v3 = vld [vmem:[%s509_s0 + $0x8] sm:$0xff]  ;;  %v19_v5 = vld [vmem:[%s509_s0 + $0x10] sm:$0xff] }
   0x2   :  { %v17_v1 = vld [vmem:[%s509_s0] sm:$0xff]  ;;  %334 = vmatprep.subr.msk.mxu0 %vm83_vm0, %v33_v0  ;;  %360 = vmatprep.subr.msk.mxu1 %vm83_vm0, %v33_v0  ;;  %v26_v4 = vld [vmem:[%s509_s0 + $0x48] sm:$0xff]  ;;  %v27_v6 = vld [vmem:[%s509_s0 + $0x50] sm:$0xff] }
   0x3   :  { %v25_v2 = vld [vmem:[%s509_s0 + $0x40] sm:$0xff]  ;;  %335 = vmatpush3.msk.msra.mxu0 %vm83_vm0, %v33_v0  ;;  %361 = vmatpush3.msk.msra.mxu1 %vm83_vm0, %v33_v0  ;;  %v20_v7 = vld [vmem:[%s509_s0 + $0x18] sm:$0xff]  ;;  %v22_v11 = vld [vmem:[%s509_s0 + $0x28] sm:$0xff] }
   0x4   :  { %336 = vmatprep.mubr.msk.f32.mxu0 %vm34_vm1, %v17_v1  ;;  %348 = vmatprep.mubr.msk.f32.mxu1 %vm34_vm1, %v25_v2  ;;  %v28_v8 = vld [vmem:[%s509_s0 + $0x58] sm:$0xff]  ;;  %v21_v9 = vld [vmem:[%s509_s0 + $0x20] sm:$0xff]  ;;  %v30_v12 = vld [vmem:[%s509_s0 + $0x68] sm:$0xff] }
   0x5   :  { %337 = vmatmul.mubr.msk.f32.vlgmr.msra.gmra.mxu0 %vm34_vm1, %v18_v3  ;;  %349 = vmatmul.mubr.msk.f32.vlgmr.msra.gmra.mxu1 %vm34_vm1, %v26_v4  ;;  %v29_v10 = vld [vmem:[%s509_s0 + $0x60] sm:$0xff]  ;;  %v23_v13 = vld [vmem:[%s509_s0 + $0x30] sm:$0xff]  ;;  %v24_v15 = vld [vmem:[%s509_s0 + $0x38] sm:$0xff] }
   0x6   :  { %339 = vmatprep.mubr.msk.f32.mxu0 %vm34_vm1, %v19_v5  ;;  %351 = vmatprep.mubr.msk.f32.mxu1 %vm34_vm1, %v27_v6  ;;  %v31_v14 = vld [vmem:[%s509_s0 + $0x70] sm:$0xff]  ;;  %v32_v16 = vld [vmem:[%s509_s0 + $0x78] sm:$0xff]  ;;  %v315_v17 = vld [vmem:[%s510_s2] ss:$0 sm:$0xff] }
   0x7   :  { %v316_v19 = vld [vmem:[%s511_s3] ss:$0 sm:$0xff] }
   0x9   :  { %340 = vmatmul.mubr.msk.f32.gmra.mxu0 %vm34_vm1, %v20_v7  ;;  %352 = vmatmul.mubr.msk.f32.gmra.mxu1 %vm34_vm1, %v28_v8 }
   0xa   :  { %342 = vmatprep.mubr.msk.f32.mxu0 %vm34_vm1, %v21_v9  ;;  %354 = vmatprep.mubr.msk.f32.mxu1 %vm34_vm1, %v29_v10 }
   0xd   :  { %343 = vmatmul.mubr.msk.f32.gmra.mxu0 %vm34_vm1, %v22_v11  ;;  %355 = vmatmul.mubr.msk.f32.gmra.mxu1 %vm34_vm1, %v30_v12 }
   0xe   :  { %345 = vmatprep.mubr.msk.f32.mxu0 %vm34_vm1, %v23_v13  ;;  %357 = vmatprep.mubr.msk.f32.mxu1 %vm34_vm1, %v31_v14 }
  0x11   :  { %346 = vmatmul.mubr.msk.f32.gmra.mxu0 %vm34_vm1, %v24_v15  ;;  %358 = vmatmul.mubr.msk.f32.gmra.mxu1 %vm34_vm1, %v32_v16 }
  0xc5   :  { %v338_v18 = vpop.f32.mrf.mxu0  ;;  %v350_v20 = vpop.f32.mrf.mxu1 }
  0xc6   :  { %v240_v21 = vmul.f32 %v338_v18, %v315_v17  ;;  %v248_v22 = vmul.f32 %v350_v20, %v315_v17 }
  0xc7   :  { %v153_v23 = vpop.f32.mrf.mxu0  ;;  %v193_v24 = vpop.f32.mrf.mxu1 }
  0xc8   :  { %v263_v25 = vadd.f32 %v316_v19, %v240_v21  ;;  %v271_v26 = vadd.f32 %v316_v19, %v248_v22  ;;  %v239_v27 = vmul.f32 %v315_v17, %v153_v23  ;;  %v247_v28 = vmul.f32 %v315_v17, %v193_v24 }
  0xc9   :  { %v341_v29 = vpop.f32.mrf.mxu0  ;;  %v353_v30 = vpop.f32.mrf.mxu1 }
  0xca   :  { %279 = vst [vmem:[%s512_s4 + $0x8] sm:$0xff] %v263_v25  ;;  %287 = vst [vmem:[%s512_s4 + $0x48] sm:$0xff] %v271_v26  ;;  %v262_v31 = vadd.f32 %v316_v19, %v239_v27  ;;  %v270_v32 = vadd.f32 %v316_v19, %v247_v28  ;;  %v242_v33 = vmul.f32 %v341_v29, %v315_v17 }
  0xcb   :  { %v250_v34 = vmul.f32 %v353_v30, %v315_v17  ;;  %v163_v35 = vpop.f32.mrf.mxu0  ;;  %v203_v36 = vpop.f32.mrf.mxu1 }
  0xcc   :  { %278 = vst [vmem:[%s512_s4] sm:$0xff] %v262_v31  ;;  %286 = vst [vmem:[%s512_s4 + $0x40] sm:$0xff] %v270_v32  ;;  %v265_v37 = vadd.f32 %v316_v19, %v242_v33  ;;  %v241_v39 = vmul.f32 %v315_v17, %v163_v35  ;;  %v249_v40 = vmul.f32 %v315_v17, %v203_v36 }
  0xcd   :  { %v273_v38 = vadd.f32 %v316_v19, %v250_v34  ;;  %v344_v41 = vpop.f32.mrf.mxu0  ;;  %v356_v42 = vpop.f32.mrf.mxu1 }
  0xce   :  { %281 = vst [vmem:[%s512_s4 + $0x18] sm:$0xff] %v265_v37  ;;  %v264_v43 = vadd.f32 %v316_v19, %v241_v39  ;;  %v272_v44 = vadd.f32 %v316_v19, %v249_v40  ;;  %v244_v45 = vmul.f32 %v344_v41, %v315_v17  ;;  %v252_v46 = vmul.f32 %v356_v42, %v315_v17 }
  0xcf   :  { %289 = vst [vmem:[%s512_s4 + $0x58] sm:$0xff] %v273_v38  ;;  %v173_v47 = vpop.f32.mrf.mxu0  ;;  %v213_v48 = vpop.f32.mrf.mxu1 }
  0xd0   :  { %280 = vst [vmem:[%s512_s4 + $0x10] sm:$0xff] %v264_v43  ;;  %288 = vst [vmem:[%s512_s4 + $0x50] sm:$0xff] %v272_v44  ;;  %v267_v49 = vadd.f32 %v316_v19, %v244_v45  ;;  %v275_v50 = vadd.f32 %v316_v19, %v252_v46  ;;  %v243_v51 = vmul.f32 %v315_v17, %v173_v47 }
  0xd1   :  { %v251_v52 = vmul.f32 %v315_v17, %v213_v48  ;;  %v347_v53 = vpop.f32.mrf.mxu0  ;;  %v359_v54 = vpop.f32.mrf.mxu1 }
  0xd2   :  { %283 = vst [vmem:[%s512_s4 + $0x28] sm:$0xff] %v267_v49  ;;  %291 = vst [vmem:[%s512_s4 + $0x68] sm:$0xff] %v275_v50  ;;  %v266_v55 = vadd.f32 %v316_v19, %v243_v51  ;;  %v246_v57 = vmul.f32 %v347_v53, %v315_v17  ;;  %v254_v58 = vmul.f32 %v359_v54, %v315_v17 }
  0xd3   :  { %v274_v56 = vadd.f32 %v316_v19, %v251_v52  ;;  %v183_v59 = vpop.f32.mrf.mxu0  ;;  %v223_v60 = vpop.f32.mrf.mxu1 }
  0xd4   :  { %282 = vst [vmem:[%s512_s4 + $0x20] sm:$0xff] %v266_v55  ;;  %v269_v61 = vadd.f32 %v316_v19, %v246_v57  ;;  %v277_v62 = vadd.f32 %v316_v19, %v254_v58  ;;  %v245_v63 = vmul.f32 %v315_v17, %v183_v59  ;;  %v253_v0 = vmul.f32 %v315_v17, %v223_v60 }
  0xd5   :  { %290 = vst [vmem:[%s512_s4 + $0x60] sm:$0xff] %v274_v56 }
  0xd6   :  { %285 = vst [vmem:[%s512_s4 + $0x38] sm:$0xff] %v269_v61  ;;  %293 = vst [vmem:[%s512_s4 + $0x78] sm:$0xff] %v277_v62  ;;  %v268_v1 = vadd.f32 %v316_v19, %v245_v63  ;;  %v276_v2 = vadd.f32 %v316_v19, %v253_v0 }
  0xd8   :  { %284 = vst [vmem:[%s512_s4 + $0x30] sm:$0xff] %v268_v1  ;;  %292 = vst [vmem:[%s512_s4 + $0x70] sm:$0xff] %v276_v2 }

</bundles_post_ra>
